<compile_context>
chip_gen: v7x
topology: tpu7x:2x2x1
jax: 0.10.0
libtpu: 0.0.40
codegen_flags: <defaults>
</compile_context>

<pallas_src>
import functools

import jax
import jax.numpy as jnp
from jax import lax
from jax.experimental import pallas as pl
from jax.experimental.pallas import tpu as pltpu

SC = 0.8
EPS = 1e-12  # F.normalize default eps


def _round_up(v, m):
    return (v + m - 1) // m * m


def _choose_tile_n(n, c_in, out_w_pad):
    """Largest row-tile (multiple of 8) fitting a conservative VMEM budget.

    Budget is sized for v7x (64 MiB physical VMEM): per grid step we hold a
    double-buffered x tile and output tile plus the resident weights.
    """
    bytes_per_row = 4 * (c_in + out_w_pad) * 2  # f32, x2 for double buffering
    budget = 32 * 1024 * 1024                   # leave headroom under the scoped limit
    max_rows = max(8, budget // max(bytes_per_row, 1))
    tile = max(8, min(1024, (max_rows // 8) * 8))
    n_pad8 = _round_up(max(n, 1), 8)
    return min(tile, n_pad8)


def _encoder2_kernel(x_ref, w_ref, out_ref, *, c_out):
    x = x_ref[...]
    # Single fused MXU call: z = x @ W_cat.T, W_cat = [w2; w1; zero-pad rows].
    # Contract x dim-1 with w dim-1 (no transposes materialized anywhere).
    z = lax.dot_general(
        x,
        w_ref[...],
        dimension_numbers=(((1,), (1,)), ((), ())),
        preferred_element_type=jnp.float32,
    )  # [TILE_N, OUT_W_PAD] f32

    col = lax.broadcasted_iota(jnp.int32, z.shape, 1)
    is_y = col < c_out  # first c_out columns = linear2 output (to be normalized)

    # Row-wise L2 norm over the linear2 columns only.
    sq = jnp.sum(jnp.where(is_y, z * z, 0.0), axis=1, keepdims=True)
    # 1 / max(||y||, eps) == rsqrt(max(||y||^2, eps^2)) -> EUP, SC folded in.
    inv = lax.rsqrt(jnp.maximum(sq, jnp.float32(EPS * EPS))) * jnp.float32(SC)

    scale = jnp.where(is_y, inv, jnp.float32(1.0))
    # One full-width, lane-dense store of the combined [y_normalized | x_ | pad] slab.
    out_ref[...] = (z * scale).astype(out_ref.dtype)


def encoder2_forward(x, w1, w2, edge_index=None):
    """x: [N, C_in]; w1, w2: [C_out, C_in] (PyTorch Linear weight layout)."""
    del edge_index  # unused, as in the reference module
    n, c_in = x.shape
    c_out = w1.shape[0]
    assert w1.shape == (c_out, c_in) and w2.shape == (c_out, c_in)

    out_w = 2 * c_out
    out_w_pad = _round_up(out_w, 128)  # lane-dense (unmasked) output stores

    # Combined weight [OUT_W_PAD, C_in]: rows [0, c_out) = w2 (normalized branch),
    # rows [c_out, 2*c_out) = w1 (x_ branch), remaining rows zero.
    # NOTE: in a real model this concat/pad is done once at parameter-load time.
    w_cat = jnp.concatenate([w2, w1], axis=0)
    if out_w_pad != out_w:
        w_cat = jnp.pad(w_cat, ((0, out_w_pad - out_w), (0, 0)))

    tile_n = _choose_tile_n(n, c_in, out_w_pad)
    n_pad = _round_up(max(n, 1), tile_n)
    x_p = x if n_pad == n else jnp.pad(x, ((0, n_pad - n), (0, 0)))

    grid = (n_pad // tile_n,)
    kernel = functools.partial(_encoder2_kernel, c_out=c_out)

    out = pl.pallas_call(
        kernel,
        out_shape=jax.ShapeDtypeStruct((n_pad, out_w_pad), x.dtype),
        grid_spec=pltpu.PrefetchScalarGridSpec(
            num_scalar_prefetch=0,
            grid=grid,
            in_specs=[
                # Row-tiled activations: pipelined HBM<->VMEM DMA.
                pl.BlockSpec((tile_n, c_in), lambda i: (i, 0)),
                # Weights: full array, constant block index -> DMA'd once, resident.
                pl.BlockSpec((out_w_pad, c_in), lambda i: (0, 0)),
            ],
            out_specs=pl.BlockSpec((tile_n, out_w_pad), lambda i: (i, 0)),
        ),
        compiler_params=pltpu.CompilerParams(
            dimension_semantics=("parallel",),      # megacore sharding on v7x
            vmem_limit_bytes=48 * 1024 * 1024,      # > 32 MiB default, < v7x 64 MiB
        ),
    )(x_p, w_cat)

    y = out[:n, :c_out]
    x_lin = out[:n, c_out:out_w]
    return y, x_lin


def _ref_forward(x, w1, w2):
    x_lin = x @ w1.T
    y = x @ w2.T
    norm = jnp.sqrt(jnp.sum(y * y, axis=1, keepdims=True))
    y = y / jnp.maximum(norm, EPS) * SC
    return y, x_lin


if __name__ == "__main__":
    key = jax.random.PRNGKey(0)
    k_x, k_w1, k_w2, k_e = jax.random.split(key, 4)

    N = 8            # number of nodes
    in_channels = 16
    out_channels = 32

    x = jax.random.normal(k_x, (N, in_channels), dtype=jnp.float32)
    # PyTorch Linear weight shape: [out, in].
    w1 = jax.random.normal(k_w1, (out_channels, in_channels), dtype=jnp.float32) * 0.1
    w2 = jax.random.normal(k_w2, (out_channels, in_channels), dtype=jnp.float32) * 0.1
    # edge_index is unused by the forward pass; dummy for signature parity.
    edge_index = jax.random.randint(k_e, (2, 12), 0, N)

    y, x_lin = encoder2_forward(x, w1, w2, edge_index)
    jax.block_until_ready((y, x_lin))

    y_ref, x_lin_ref = _ref_forward(x, w1, w2)
    assert jnp.allclose(y, y_ref, atol=1e-5, rtol=1e-5)
    assert jnp.allclose(x_lin, x_lin_ref, atol=1e-5, rtol=1e-5)

    print("KERNEL_OK")
</pallas_src>

<mosaic_0001>
module attributes {stable_mosaic.version = 11 : i64} {
  func.func @_encoder2_kernel(%arg0: i32, %arg1: memref<8x16xf32, #tpu.memory_space<vmem>>, %arg2: memref<128x16xf32, #tpu.memory_space<vmem>>, %arg3: memref<8x128xf32, #tpu.memory_space<vmem>>) attributes {dimension_semantics = [#tpu.dimension_semantics<parallel>], iteration_bounds = array<i64: 1>, scalar_prefetch = 0 : i64, scratch_operands = 0 : i64, tpu.core_type = #tpu.core_type<tc>, window_params = [{transform_indices = @transform_0, window_bounds = array<i64: 8, 16>}, {pipeline_mode = #tpu.pipeline_mode<synchronous>, transform_indices = @transform_1, window_bounds = array<i64: 128, 16>}, {transform_indices = @transform_2, window_bounds = array<i64: 8, 128>}]} {
    %c0 = arith.constant 0 : index
    %c0_0 = arith.constant 0 : index
    %0 = vector.load %arg1[%c0, %c0_0] : memref<8x16xf32, #tpu.memory_space<vmem>>, vector<8x16xf32>
    %c0_1 = arith.constant 0 : index
    %c0_2 = arith.constant 0 : index
    %1 = vector.load %arg2[%c0_1, %c0_2] : memref<128x16xf32, #tpu.memory_space<vmem>>, vector<128x16xf32>
    %cst = arith.constant dense<0.000000e+00> : vector<8x128xf32>
    %2 = tpu.matmul %0, %1, %cst {dimension_numbers = #tpu.dot_dimension_numbers<[1], [1], [0], [0], [0, 0, 1, 0], [], []>} : vector<8x16xf32>, vector<128x16xf32>, vector<8x128xf32> -> vector<8x128xf32>
    %3 = tpu.iota {dimensions = array<i32: 1>} : vector<8x128xi32>
    %c32_i32 = arith.constant 32 : i32
    %4 = vector.broadcast %c32_i32 : i32 to vector<8x128xi32>
    %5 = arith.cmpi slt, %3, %4 : vector<8x128xi32>
    %6 = arith.mulf %2, %2 : vector<8x128xf32>
    %cst_3 = arith.constant 0.000000e+00 : f32
    %7 = vector.broadcast %cst_3 : f32 to vector<8x128xf32>
    %8 = arith.select %5, %6, %7 : vector<8x128xi1>, vector<8x128xf32>
    %cst_4 = arith.constant dense<0.000000e+00> : vector<8xf32>
    %9 = vector.multi_reduction <add>, %8, %cst_4 [1] : vector<8x128xf32> to vector<8xf32>
    %10 = vector.shape_cast %9 : vector<8xf32> to vector<8x1xf32>
    %cst_5 = arith.constant 1.000000e-24 : f32
    %11 = vector.broadcast %cst_5 : f32 to vector<8x1xf32>
    %12 = arith.maximumf %10, %11 : vector<8x1xf32>
    %13 = math.rsqrt %12 : vector<8x1xf32>
    %cst_6 = arith.constant 8.000000e-01 : f32
    %14 = vector.broadcast %cst_6 : f32 to vector<8x1xf32>
    %15 = arith.mulf %13, %14 : vector<8x1xf32>
    %cst_7 = arith.constant 1.000000e+00 : f32
    %16 = vector.shape_cast %15 : vector<8x1xf32> to vector<8x1xf32>
    %17 = vector.broadcast %16 : vector<8x1xf32> to vector<8x128xf32>
    %18 = vector.broadcast %cst_7 : f32 to vector<8x128xf32>
    %19 = arith.select %5, %17, %18 : vector<8x128xi1>, vector<8x128xf32>
    %20 = arith.mulf %2, %19 : vector<8x128xf32>
    %c0_8 = arith.constant 0 : index
    %c0_9 = arith.constant 0 : index
    %21 = vector.load %arg3[%c0_8, %c0_9] : memref<8x128xf32, #tpu.memory_space<vmem>>, vector<8x128xf32>
    tpu.vector_store %arg3[%c0_8, %c0_9], %20 {strides = array<i32>} : memref<8x128xf32, #tpu.memory_space<vmem>>, vector<8x128xf32>,
    return
  }
  func.func @transform_0(%arg0: i32) -> (i32, i32) {
    %c0_i32 = arith.constant 0 : i32
    %c0_i32_0 = arith.constant 0 : i32
    return %arg0, %c0_i32 : i32, i32
  }
  func.func @transform_1(%arg0: i32) -> (i32, i32) {
    %c0_i32 = arith.constant 0 : i32
    %c0_i32_0 = arith.constant 0 : i32
    %c0_i32_1 = arith.constant 0 : i32
    return %c0_i32, %c0_i32_0 : i32, i32
  }
  func.func @transform_2(%arg0: i32) -> (i32, i32) {
    %c0_i32 = arith.constant 0 : i32
    %c0_i32_0 = arith.constant 0 : i32
    return %arg0, %c0_i32 : i32, i32
  }
}

</mosaic_0001>

<bundles_post_ra>
// kernel: tpu_custom_call.1
= control target key start
LH: loop header
LB: loop body
LE: loop exit
PB: predicated region body
PF: predicated region fallthrough
CT: control target
= control target key end

     0   :  { %vm29_vm0 = vcmask 130048   ;;  %v309_v2 = vmov 0.0|0.0   ;;  %vm310_vm2 = vmmov 0   ;;  %v311_v5 = vmov 0.0   ;;  %s414_s0 = inlined_call_operand.vmem [shape: f32[8,16], index: 0, kind: input, shape index: {}]   ;;  %s415_s1 = inlined_call_operand.vmem [shape: f32[128,16], index: 1, kind: input, shape index: {}]   ;;  %s416_s2 = inlined_call_operand.hbm [shape: f32[8,128], index: 2, kind: output, shape index: {}]  }
   0x1   :  { %v13_v0 = vld [vmem:[%s415_s1] sm:$0xff]  ;;  %v14_v1 = vld [vmem:[%s415_s1 + $0x8] sm:$0xff]  ;;  %247 = vmatprep.subr.bf16.mxu0 %v309_v2  ;;  %vm336_vm1 = vmpackc.low %vm29_vm0, %vm29_vm0  ;;  %244 = vmatprep.mubr.msk.f32.mxu0 %vm310_vm2, %v311_v5 }
   0x2   :  { %v248_v3 = vpack.c.bf16 %v14_v1, %v13_v0  ;;  %v15_v6 = vld [vmem:[%s415_s1 + $0x10] sm:$0xff]  ;;  %v16_v7 = vld [vmem:[%s415_s1 + $0x18] sm:$0xff] }
   0x4   :  { %250 = vmatpush3.bf16.xpose.msk.msra.mxu0 %vm336_vm1, %v248_v3 }
   0x5   :  { %251 = vmatprep.subr.bf16.mxu0 %v309_v2 }
   0x6   :  { %7 = vsyncpa [#allocation3], 0  ;;  %v252_v8 = vpack.c.bf16 %v16_v7, %v15_v6  ;;  %v17_v9 = vld [vmem:[%s415_s1 + $0x20] sm:$0xff]  ;;  %v18_v10 = vld [vmem:[%s415_s1 + $0x28] sm:$0xff]  ;;  %v151_v28 = vlaneseq }
   0x7   :  { %v256_v11 = vpack.c.bf16 %v18_v10, %v17_v9  ;;  %v19_v12 = vld [vmem:[%s415_s1 + $0x30] sm:$0xff]  ;;  %v20_v13 = vld [vmem:[%s415_s1 + $0x38] sm:$0xff]  ;;  %v21_v15 = vld [vmem:[%s415_s1 + $0x40] sm:$0xff] }
   0x8   :  { %v260_v14 = vpack.c.bf16 %v20_v13, %v19_v12  ;;  %v22_v16 = vld [vmem:[%s415_s1 + $0x48] sm:$0xff]  ;;  %v23_v18 = vld [vmem:[%s415_s1 + $0x50] sm:$0xff]  ;;  %v24_v19 = vld [vmem:[%s415_s1 + $0x58] sm:$0xff]  ;;  %v152_v29 = vand.u32 127, %v151_v28 }
   0x9   :  { %v264_v17 = vpack.c.bf16 %v22_v16, %v21_v15  ;;  %v268_v20 = vpack.c.bf16 %v24_v19, %v23_v18  ;;  %v25_v21 = vld [vmem:[%s415_s1 + $0x60] sm:$0xff]  ;;  %v26_v22 = vld [vmem:[%s415_s1 + $0x68] sm:$0xff]  ;;  %v27_v24 = vld [vmem:[%s415_s1 + $0x70] sm:$0xff] }
   0xa   :  { %v272_v23 = vpack.c.bf16 %v26_v22, %v25_v21  ;;  %v28_v25 = vld [vmem:[%s415_s1 + $0x78] sm:$0xff]  ;;  %v12_v27 = vld [vmem:[%s414_s0] sm:$0xff]  ;;  %vm153_vm3 = vcmp.lt.s32.totalorder %v152_v29, 32  ;;  %s312_s1 = smov [#allocation2]  }
   0xb   :  { %v276_v26 = vpack.c.bf16 %v28_v25, %v27_v24  ;;  %s170_s15 = sshll.u32 %s312_s1, 4  ;;  %s171_s15 = int_to_ptr.vmem [resolvable:$true] %s170_s15 }
   0xc   :  { %254 = vmatpush3.bf16.xpose.msk.msra.mxu0 %vm336_vm1, %v252_v8  ;;  %s285_s0 = scalar_lea.vmem %s171_s15, 128  ;;  %p290_p1 = scmp.lt.s32.totalorder %s171_s15, %s171_s15 }
   0xd   :  { %255 = vmatprep.subr.bf16.mxu0 %v309_v2  ;;  %p286_p0 = scmp.ne.s32.totalorder %s171_s15, %s285_s0  ;;  %p291_p2 = scmp.lt.s32.totalorder %s285_s0, %s285_s0 }
   0xf   :  { %p292_p3 = por %p291_p2, %p290_p1 }
  0x11   :  { %p293_p4 = pnand %p292_p3, %p286_p0 }
  0x14   :  { %258 = vmatpush3.bf16.xpose.msk.msra.mxu0 %vm336_vm1, %v256_v11 }
  0x15   :  { %259 = vmatprep.subr.bf16.mxu0 %v309_v2 }
  0x1c   :  { %262 = vmatpush3.bf16.xpose.msk.msra.mxu0 %vm336_vm1, %v260_v14 }
  0x1d   :  { %263 = vmatprep.subr.bf16.mxu0 %v309_v2 }
  0x24   :  { %266 = vmatpush3.bf16.xpose.msk.msra.mxu0 %vm336_vm1, %v264_v17 }
  0x25   :  { %267 = vmatprep.subr.bf16.mxu0 %v309_v2 }
  0x2c   :  { %270 = vmatpush3.bf16.xpose.msk.msra.mxu0 %vm336_vm1, %v268_v20 }
  0x2d   :  { %271 = vmatprep.subr.bf16.mxu0 %v309_v2 }
  0x34   :  { %274 = vmatpush3.bf16.xpose.msk.msra.mxu0 %vm336_vm1, %v272_v23 }
  0x35   :  { %275 = vmatprep.subr.bf16.mxu0 %v309_v2 }
  0x3c   :  { %278 = vmatpush3.bf16.xpose.msk.msra.mxu0 %vm336_vm1, %v276_v26 }
  0x43   :  { %245 = vmatmul.mubr.msk.f32.vlgmr.msra.gmra.mrb[0].mxu0 %vm29_vm0, %v12_v27 }
 0x116   :  { %v147_v30 = vpop.f32.mrb[0].mxu0 }
 0x117   :  { %v246_v31 = vpop.f32.mrb[1].mxu0  ;;  %v154_v32 = vmul.f32 %v147_v30, %v147_v30 }
 0x119   :  { %v155_v33 = vsel %vm153_vm3, %v154_v32, 0.0 }
 0x11a   :  { %156 = vadd.xlane.f32.xlu0 %v155_v33 }
 0x1a7   :  { %v157_v34 = vpop.xlane.xlu0 %156 }
 0x1a8   :  { %v158_v35 = vmax.f32 %v157_v34, 1e-24 }
 0x1aa   :  { %283 = vrsqrt.f32 %v158_v35 }
 0x1b4   :  { %v284_v36 = vpop.eup %283 }
 0x1b5   :  { %v160_v37 = vmul.f32 0.8, %v284_v36 }
 0x1b7   :  { %v161_v38 = vsel %vm153_vm3, %v160_v37, 1.0 }
 0x1b8   :  { %v162_v39 = vmul.f32 %v161_v38, %v147_v30 }
 0x1ba   :  { %163 = vst [vmem:[#allocation2] sm:$0xff] %v162_v39 }
 0x1bb   :  { %296 = shalt.err (!%p293_p4)
}
 0x1bc   :  { %s297_s18 = scalar_lea.hbm %s416_s2, 128 }
 0x1bd   :  { %p298_p5 = scmp.ne.s32.totalorder %s416_s2, %s297_s18  ;;  %p301_p6 = scmp.lt.u32.totalorder %s297_s18, %s416_s2 }
 0x1bf   :  { %p303_p7 = pnand %p301_p6, %p298_p5 }
 0x1c1   :  { %306 = shalt.err (!%p303_p7)
}
 0x1c2   :  { %173 = dma.vmem_to_hbm [thread:$0]  %s171_s15, 128, %s416_s2, [#allocation3]  }
 0x1c3   :  { %307 = dma.done.wait [#allocation3], 128  }
 0x1c4   :  { %308 = vsyncadd [#allocation3], 4294967168 }
 0x1c5   :  { %177 = vsyncpa [#allocation3], 1 }

</bundles_post_ra>
